<compile_context>
chip_gen: v7x
topology: tpu7x:2x2x1
jax: 0.10.0
libtpu: 0.0.40
codegen_flags: <defaults>
</compile_context>

<pallas_src>
import jax
import jax.numpy as jnp
from jax.experimental import pallas as pl
from jax.experimental.pallas import tpu as pltpu

N_LEVELS = 127.0   # 2**(8-1) - 1 for 8-bit symmetric quantization
EPS = 1e-8


def _round_up(n, m):
    return ((n + m - 1) // m) * m


def qdense_kernel(inv_sf_ref, x_ref,
                  w0_ref, b0_ref, s0_ref,
                  w1_ref, b1_ref, s1_ref,
                  w2_ref, b2_ref, s2_ref,
                  w3_ref, b3_ref, s3_ref,
                  o_ref):
    """Activation quant + 4 integer-emulated linears (weight quant precomputed)."""
    inv_sf = inv_sf_ref[0, 0]

    # ---- QuantAct: per-tensor symmetric 8-bit quantization of the input ----
    x_int = jnp.clip(jnp.round(x_ref[...] * inv_sf), -N_LEVELS, N_LEVELS)

    # ---- layer '0' (16 -> 64): exact small-integer operands -> bf16 MXU path
    acc = jnp.dot(x_int.astype(jnp.bfloat16), w0_ref[...],
                  preferred_element_type=jnp.float32)
    h = (acc + b0_ref[...]) * s0_ref[...]          # s0 = bias_sf0 * (1/act_sf)

    # ---- layer '2' (64 -> 32)
    acc = jnp.dot(h, w1_ref[...], preferred_element_type=jnp.float32)
    h = (acc + b1_ref[...]) * s1_ref[...]          # s1 = bias_sf1 * (1/act_sf)

    # ---- layer '4' (32 -> 32)
    acc = jnp.dot(h, w2_ref[...], preferred_element_type=jnp.float32)
    h = (acc + b2_ref[...]) * s2_ref[...]          # s2 = bias_sf2 * (1/act_sf)

    # ---- layer '6' (32 -> 5, zero-padded to 8 output lanes)
    acc = jnp.dot(h, w3_ref[...], preferred_element_type=jnp.float32)
    o_ref[...] = ((acc + b3_ref[...]) * s3_ref[...]).astype(o_ref.dtype)


def prepare_qdense_weights(params):
    """One-time weight-quantization prep, hoisted out of the per-call path.

    params = [(w, b), ...] with w: (out, in), b: (1, out) (PyTorch layout).
    Returns per-layer (w_int_t, w_sf_t, b): w_int_t (in, out) pre-transposed
    (bf16 for layer 0, last layer padded to 8 output lanes), w_sf_t (1, out),
    bias b (1, out) in f32 (bias quant itself depends on act_sf -> per call).
    """
    n_layers = len(params)
    out_dim = params[-1][0].shape[0]
    out_pad = _round_up(out_dim, 8)

    prepped = []
    for idx, (w, b) in enumerate(params):
        # per-output-channel symmetric 8-bit weight quantization
        w_absmax = jnp.maximum(jnp.max(jnp.abs(w), axis=1, keepdims=True), EPS)
        w_sf = w_absmax / N_LEVELS                                      # (out,1)
        w_int_t = jnp.clip(jnp.round(w / w_sf), -N_LEVELS, N_LEVELS).T  # (in,out)
        w_sf_t = w_sf.T.astype(jnp.float32)                             # (1,out)
        b = b.astype(jnp.float32)

        if idx == 0:
            # exact integers in [-127,127] are lossless in bf16 -> fast MXU mode
            w_int_t = w_int_t.astype(jnp.bfloat16)
        else:
            w_int_t = w_int_t.astype(jnp.float32)

        if idx == n_layers - 1:
            pad = out_pad - w.shape[0]
            w_int_t = jnp.pad(w_int_t, ((0, 0), (0, pad)))
            w_sf_t = jnp.pad(w_sf_t, ((0, 0), (0, pad)), constant_values=1.0)
            b = jnp.pad(b, ((0, 0), (0, pad)))

        prepped.append((w_int_t, w_sf_t, b))
    return prepped


def qdense_forward(x, prepped, out_dim, tm=1024):
    """Per-call forward: act-scale + tiny bias quant + one pallas_call."""
    B, in_dim = x.shape
    n_layers = len(prepped)
    out_pad = prepped[-1][0].shape[1]

    # ----- per-call scalar prep (depends on the activation scale) ------------
    act_sf = jnp.maximum(jnp.max(jnp.abs(x)), EPS) / N_LEVELS
    inv_sf = (1.0 / act_sf).astype(jnp.float32)

    layer_args = []
    for idx, (w_int_t, w_sf_t, b) in enumerate(prepped):
        bias_sf = w_sf_t * act_sf                                       # (1,out)
        b_int = jnp.clip(jnp.round(b / bias_sf), -N_LEVELS, N_LEVELS)   # (1,out)
        last = idx == n_layers - 1
        # Fold the next layer's "divide by act_sf" into this layer's rescale.
        scale = bias_sf if last else bias_sf * inv_sf
        layer_args += [w_int_t, b_int.astype(jnp.float32),
                       scale.astype(jnp.float32)]

    # ------------------------- batch tiling / specs ---------------------------
    # Big tiles amortize per-step overhead; cap so large batches give >= 2
    # grid steps (both v7x TensorCores get work). VMEM stays far below limits.
    cap = _round_up(max((B + 1) // 2, 8), 8)
    tm = _round_up(max(8, min(tm, cap)), 8)
    n_steps = pl.cdiv(B, tm)
    b_pad = n_steps * tm

    x_p = x if x.dtype == jnp.float32 else x.astype(jnp.float32)
    if b_pad != B:
        x_p = jnp.pad(x_p, ((0, b_pad - B), (0, 0)))

    smem_spec = pl.BlockSpec((1, 1), lambda i: (0, 0),
                             memory_space=pltpu.MemorySpace.SMEM)
    x_spec = pl.BlockSpec((tm, in_dim), lambda i: (i, 0))
    # Resident operands: constant index_map -> stay in VMEM across the grid.
    resident_specs = [pl.BlockSpec(a.shape, lambda i: (0, 0)) for a in layer_args]
    out_spec = pl.BlockSpec((tm, out_pad), lambda i: (i, 0))

    out = pl.pallas_call(
        qdense_kernel,
        out_shape=jax.ShapeDtypeStruct((b_pad, out_pad), jnp.float32),
        grid=(n_steps,),
        in_specs=[smem_spec, x_spec] + resident_specs,
        out_specs=out_spec,
        compiler_params=pltpu.CompilerParams(
            dimension_semantics=("parallel",)),
    )(inv_sf.reshape(1, 1), x_p, *layer_args)

    return out[:B, :out_dim]


def _reference(x, params):
    """Pure-JAX reference of the original module semantics (for verification)."""
    absmax = jnp.maximum(jnp.max(jnp.abs(x)), EPS)
    act_sf = absmax / N_LEVELS
    xi = jnp.clip(jnp.round(x / act_sf), -N_LEVELS, N_LEVELS)
    out = None
    for w, b in params:
        w_absmax = jnp.maximum(jnp.max(jnp.abs(w), axis=1, keepdims=True), EPS)
        w_sf = w_absmax / N_LEVELS
        w_int = jnp.clip(jnp.round(w / w_sf), -N_LEVELS, N_LEVELS)
        bias_sf = w_sf.T * act_sf
        b_int = jnp.clip(jnp.round(b / bias_sf), -N_LEVELS, N_LEVELS)
        out = (xi @ w_int.T + b_int) * bias_sf
        xi = out / act_sf
    return out


def make_params(key, dims):
    """Deterministic PyTorch-Linear-like init: U(-1/sqrt(fan_in), 1/sqrt(fan_in))."""
    params = []
    for fan_in, fan_out in zip(dims[:-1], dims[1:]):
        key, kw, kb = jax.random.split(key, 3)
        bound = 1.0 / (fan_in ** 0.5)
        w = jax.random.uniform(kw, (fan_out, fan_in), jnp.float32, -bound, bound)
        b = jax.random.uniform(kb, (1, fan_out), jnp.float32, -bound, bound)
        params.append((w, b))
    return params


if __name__ == "__main__":
    key = jax.random.PRNGKey(0)
    key, kx = jax.random.split(key)

    batch = 8
    dims = [16, 64, 32, 32, 5]        # hls4ml jet-tagging dense model dims
    x = jax.random.normal(kx, (batch, dims[0]), jnp.float32)
    params = make_params(key, dims)

    # One-time weight-quant prep (hoisted out of the serving path).
    prepped = prepare_qdense_weights(params)

    fwd = jax.jit(qdense_forward, static_argnames=("out_dim", "tm"))
    out = fwd(x, prepped, out_dim=dims[-1])
    out = jax.block_until_ready(out)

    ref = _reference(x, params)
    assert out.shape == (batch, dims[-1])
    assert jnp.allclose(out, ref, rtol=1e-4, atol=1e-4), "mismatch vs reference"

    print("KERNEL_OK")
</pallas_src>

<mosaic_0001>
module attributes {stable_mosaic.version = 11 : i64} {
  func.func @qdense_kernel(%arg0: i32, %arg1: memref<1x1xf32, #tpu.memory_space<smem>>, %arg2: memref<8x16xf32, #tpu.memory_space<vmem>>, %arg3: memref<16x64xbf16, #tpu.memory_space<vmem>>, %arg4: memref<1x64xf32, #tpu.memory_space<vmem>>, %arg5: memref<1x64xf32, #tpu.memory_space<vmem>>, %arg6: memref<64x32xf32, #tpu.memory_space<vmem>>, %arg7: memref<1x32xf32, #tpu.memory_space<vmem>>, %arg8: memref<1x32xf32, #tpu.memory_space<vmem>>, %arg9: memref<32x32xf32, #tpu.memory_space<vmem>>, %arg10: memref<1x32xf32, #tpu.memory_space<vmem>>, %arg11: memref<1x32xf32, #tpu.memory_space<vmem>>, %arg12: memref<32x8xf32, #tpu.memory_space<vmem>>, %arg13: memref<1x8xf32, #tpu.memory_space<vmem>>, %arg14: memref<1x8xf32, #tpu.memory_space<vmem>>, %arg15: memref<8x8xf32, #tpu.memory_space<vmem>>) attributes {dimension_semantics = [#tpu.dimension_semantics<parallel>], iteration_bounds = array<i64: 1>, scalar_prefetch = 0 : i64, scratch_operands = 0 : i64, tpu.core_type = #tpu.core_type<tc>, window_params = [{transform_indices = @transform_0, window_bounds = array<i64: 1, 1>}, {transform_indices = @transform_1, window_bounds = array<i64: 8, 16>}, {pipeline_mode = #tpu.pipeline_mode<synchronous>, transform_indices = @transform_2, window_bounds = array<i64: 16, 64>}, {pipeline_mode = #tpu.pipeline_mode<synchronous>, transform_indices = @transform_3, window_bounds = array<i64: 1, 64>}, {pipeline_mode = #tpu.pipeline_mode<synchronous>, transform_indices = @transform_4, window_bounds = array<i64: 1, 64>}, {pipeline_mode = #tpu.pipeline_mode<synchronous>, transform_indices = @transform_5, window_bounds = array<i64: 64, 32>}, {pipeline_mode = #tpu.pipeline_mode<synchronous>, transform_indices = @transform_6, window_bounds = array<i64: 1, 32>}, {pipeline_mode = #tpu.pipeline_mode<synchronous>, transform_indices = @transform_7, window_bounds = array<i64: 1, 32>}, {pipeline_mode = #tpu.pipeline_mode<synchronous>, transform_indices = @transform_8, window_bounds = array<i64: 32, 32>}, {pipeline_mode = #tpu.pipeline_mode<synchronous>, transform_indices = @transform_9, window_bounds = array<i64: 1, 32>}, {pipeline_mode = #tpu.pipeline_mode<synchronous>, transform_indices = @transform_10, window_bounds = array<i64: 1, 32>}, {pipeline_mode = #tpu.pipeline_mode<synchronous>, transform_indices = @transform_11, window_bounds = array<i64: 32, 8>}, {pipeline_mode = #tpu.pipeline_mode<synchronous>, transform_indices = @transform_12, window_bounds = array<i64: 1, 8>}, {pipeline_mode = #tpu.pipeline_mode<synchronous>, transform_indices = @transform_13, window_bounds = array<i64: 1, 8>}, {transform_indices = @transform_14, window_bounds = array<i64: 8, 8>}]} {
    %c0 = arith.constant 0 : index
    %c0_0 = arith.constant 0 : index
    %0 = memref.load %arg1[%c0, %c0_0] : memref<1x1xf32, #tpu.memory_space<smem>>
    %c0_1 = arith.constant 0 : index
    %c0_2 = arith.constant 0 : index
    %1 = vector.load %arg2[%c0_1, %c0_2] : memref<8x16xf32, #tpu.memory_space<vmem>>, vector<8x16xf32>
    %2 = vector.broadcast %0 : f32 to vector<8x16xf32>
    %3 = arith.mulf %1, %2 : vector<8x16xf32>
    %4 = math.roundeven %3 : vector<8x16xf32>
    %cst = arith.constant -1.270000e+02 : f32
    %cst_3 = arith.constant 1.270000e+02 : f32
    %5 = vector.broadcast %cst : f32 to vector<8x16xf32>
    %6 = arith.maximumf %5, %4 : vector<8x16xf32>
    %7 = vector.broadcast %cst_3 : f32 to vector<8x16xf32>
    %8 = arith.minimumf %7, %6 : vector<8x16xf32>
    %9 = arith.truncf %8 : vector<8x16xf32> to vector<8x16xbf16>
    %c0_4 = arith.constant 0 : index
    %c0_5 = arith.constant 0 : index
    %10 = vector.load %arg3[%c0_4, %c0_5] : memref<16x64xbf16, #tpu.memory_space<vmem>>, vector<16x64xbf16>
    %cst_6 = arith.constant dense<0.000000e+00> : vector<8x64xf32>
    %11 = tpu.matmul %9, %10, %cst_6 {dimension_numbers = #tpu.dot_dimension_numbers<[1], [0], [0], [1], [0, 0, 1, 1], [], []>} : vector<8x16xbf16>, vector<16x64xbf16>, vector<8x64xf32> -> vector<8x64xf32>
    %c0_7 = arith.constant 0 : index
    %c0_8 = arith.constant 0 : index
    %12 = vector.load %arg4[%c0_7, %c0_8] : memref<1x64xf32, #tpu.memory_space<vmem>>, vector<1x64xf32>
    %13 = vector.broadcast %12 : vector<1x64xf32> to vector<8x64xf32>
    %14 = arith.addf %11, %13 : vector<8x64xf32>
    %c0_9 = arith.constant 0 : index
    %c0_10 = arith.constant 0 : index
    %15 = vector.load %arg5[%c0_9, %c0_10] : memref<1x64xf32, #tpu.memory_space<vmem>>, vector<1x64xf32>
    %16 = vector.broadcast %15 : vector<1x64xf32> to vector<8x64xf32>
    %17 = arith.mulf %14, %16 : vector<8x64xf32>
    %c0_11 = arith.constant 0 : index
    %c0_12 = arith.constant 0 : index
    %18 = vector.load %arg6[%c0_11, %c0_12] : memref<64x32xf32, #tpu.memory_space<vmem>>, vector<64x32xf32>
    %cst_13 = arith.constant dense<0.000000e+00> : vector<8x32xf32>
    %19 = tpu.matmul %17, %18, %cst_13 {dimension_numbers = #tpu.dot_dimension_numbers<[1], [0], [0], [1], [0, 0, 1, 1], [], []>} : vector<8x64xf32>, vector<64x32xf32>, vector<8x32xf32> -> vector<8x32xf32>
    %c0_14 = arith.constant 0 : index
    %c0_15 = arith.constant 0 : index
    %20 = vector.load %arg7[%c0_14, %c0_15] : memref<1x32xf32, #tpu.memory_space<vmem>>, vector<1x32xf32>
    %21 = vector.broadcast %20 : vector<1x32xf32> to vector<8x32xf32>
    %22 = arith.addf %19, %21 : vector<8x32xf32>
    %c0_16 = arith.constant 0 : index
    %c0_17 = arith.constant 0 : index
    %23 = vector.load %arg8[%c0_16, %c0_17] : memref<1x32xf32, #tpu.memory_space<vmem>>, vector<1x32xf32>
    %24 = vector.broadcast %23 : vector<1x32xf32> to vector<8x32xf32>
    %25 = arith.mulf %22, %24 : vector<8x32xf32>
    %c0_18 = arith.constant 0 : index
    %c0_19 = arith.constant 0 : index
    %26 = vector.load %arg9[%c0_18, %c0_19] : memref<32x32xf32, #tpu.memory_space<vmem>>, vector<32x32xf32>
    %cst_20 = arith.constant dense<0.000000e+00> : vector<8x32xf32>
    %27 = tpu.matmul %25, %26, %cst_20 {dimension_numbers = #tpu.dot_dimension_numbers<[1], [0], [0], [1], [0, 0, 1, 1], [], []>} : vector<8x32xf32>, vector<32x32xf32>, vector<8x32xf32> -> vector<8x32xf32>
    %c0_21 = arith.constant 0 : index
    %c0_22 = arith.constant 0 : index
    %28 = vector.load %arg10[%c0_21, %c0_22] : memref<1x32xf32, #tpu.memory_space<vmem>>, vector<1x32xf32>
    %29 = vector.broadcast %28 : vector<1x32xf32> to vector<8x32xf32>
    %30 = arith.addf %27, %29 : vector<8x32xf32>
    %c0_23 = arith.constant 0 : index
    %c0_24 = arith.constant 0 : index
    %31 = vector.load %arg11[%c0_23, %c0_24] : memref<1x32xf32, #tpu.memory_space<vmem>>, vector<1x32xf32>
    %32 = vector.broadcast %31 : vector<1x32xf32> to vector<8x32xf32>
    %33 = arith.mulf %30, %32 : vector<8x32xf32>
    %c0_25 = arith.constant 0 : index
    %c0_26 = arith.constant 0 : index
    %34 = vector.load %arg12[%c0_25, %c0_26] : memref<32x8xf32, #tpu.memory_space<vmem>>, vector<32x8xf32>
    %cst_27 = arith.constant dense<0.000000e+00> : vector<8x8xf32>
    %35 = tpu.matmul %33, %34, %cst_27 {dimension_numbers = #tpu.dot_dimension_numbers<[1], [0], [0], [1], [0, 0, 1, 1], [], []>} : vector<8x32xf32>, vector<32x8xf32>, vector<8x8xf32> -> vector<8x8xf32>
    %c0_28 = arith.constant 0 : index
    %c0_29 = arith.constant 0 : index
    %36 = vector.load %arg13[%c0_28, %c0_29] : memref<1x8xf32, #tpu.memory_space<vmem>>, vector<1x8xf32>
    %37 = vector.broadcast %36 : vector<1x8xf32> to vector<8x8xf32>
    %38 = arith.addf %35, %37 : vector<8x8xf32>
    %c0_30 = arith.constant 0 : index
    %c0_31 = arith.constant 0 : index
    %39 = vector.load %arg14[%c0_30, %c0_31] : memref<1x8xf32, #tpu.memory_space<vmem>>, vector<1x8xf32>
    %40 = vector.broadcast %39 : vector<1x8xf32> to vector<8x8xf32>
    %41 = arith.mulf %38, %40 : vector<8x8xf32>
    %c0_32 = arith.constant 0 : index
    %c0_33 = arith.constant 0 : index
    %42 = vector.load %arg15[%c0_32, %c0_33] : memref<8x8xf32, #tpu.memory_space<vmem>>, vector<8x8xf32>
    tpu.vector_store %arg15[%c0_32, %c0_33], %41 {strides = array<i32>} : memref<8x8xf32, #tpu.memory_space<vmem>>, vector<8x8xf32>,
    return
  }
  func.func @transform_0(%arg0: i32) -> (i32, i32) {
    %c0_i32 = arith.constant 0 : i32
    %c0_i32_0 = arith.constant 0 : i32
    %c0_i32_1 = arith.constant 0 : i32
    return %c0_i32, %c0_i32_0 : i32, i32
  }
  func.func @transform_1(%arg0: i32) -> (i32, i32) {
    %c0_i32 = arith.constant 0 : i32
    %c0_i32_0 = arith.constant 0 : i32
    return %arg0, %c0_i32 : i32, i32
  }
  func.func @transform_2(%arg0: i32) -> (i32, i32) {
    %c0_i32 = arith.constant 0 : i32
    %c0_i32_0 = arith.constant 0 : i32
    %c0_i32_1 = arith.constant 0 : i32
    return %c0_i32, %c0_i32_0 : i32, i32
  }
  func.func @transform_3(%arg0: i32) -> (i32, i32) {
    %c0_i32 = arith.constant 0 : i32
    %c0_i32_0 = arith.constant 0 : i32
    %c0_i32_1 = arith.constant 0 : i32
    return %c0_i32, %c0_i32_0 : i32, i32
  }
  func.func @transform_4(%arg0: i32) -> (i32, i32) {
    %c0_i32 = arith.constant 0 : i32
    %c0_i32_0 = arith.constant 0 : i32
    %c0_i32_1 = arith.constant 0 : i32
    return %c0_i32, %c0_i32_0 : i32, i32
  }
  func.func @transform_5(%arg0: i32) -> (i32, i32) {
    %c0_i32 = arith.constant 0 : i32
    %c0_i32_0 = arith.constant 0 : i32
    %c0_i32_1 = arith.constant 0 : i32
    return %c0_i32, %c0_i32_0 : i32, i32
  }
  func.func @transform_6(%arg0: i32) -> (i32, i32) {
    %c0_i32 = arith.constant 0 : i32
    %c0_i32_0 = arith.constant 0 : i32
    %c0_i32_1 = arith.constant 0 : i32
    return %c0_i32, %c0_i32_0 : i32, i32
  }
  func.func @transform_7(%arg0: i32) -> (i32, i32) {
    %c0_i32 = arith.constant 0 : i32
    %c0_i32_0 = arith.constant 0 : i32
    %c0_i32_1 = arith.constant 0 : i32
    return %c0_i32, %c0_i32_0 : i32, i32
  }
  func.func @transform_8(%arg0: i32) -> (i32, i32) {
    %c0_i32 = arith.constant 0 : i32
    %c0_i32_0 = arith.constant 0 : i32
    %c0_i32_1 = arith.constant 0 : i32
    return %c0_i32, %c0_i32_0 : i32, i32
  }
  func.func @transform_9(%arg0: i32) -> (i32, i32) {
    %c0_i32 = arith.constant 0 : i32
    %c0_i32_0 = arith.constant 0 : i32
    %c0_i32_1 = arith.constant 0 : i32
    return %c0_i32, %c0_i32_0 : i32, i32
  }
  func.func @transform_10(%arg0: i32) -> (i32, i32) {
    %c0_i32 = arith.constant 0 : i32
    %c0_i32_0 = arith.constant 0 : i32
    %c0_i32_1 = arith.constant 0 : i32
    return %c0_i32, %c0_i32_0 : i32, i32
  }
  func.func @transform_11(%arg0: i32) -> (i32, i32) {
    %c0_i32 = arith.constant 0 : i32
    %c0_i32_0 = arith.constant 0 : i32
    %c0_i32_1 = arith.constant 0 : i32
    return %c0_i32, %c0_i32_0 : i32, i32
  }
  func.func @transform_12(%arg0: i32) -> (i32, i32) {
    %c0_i32 = arith.constant 0 : i32
    %c0_i32_0 = arith.constant 0 : i32
    %c0_i32_1 = arith.constant 0 : i32
    return %c0_i32, %c0_i32_0 : i32, i32
  }
  func.func @transform_13(%arg0: i32) -> (i32, i32) {
    %c0_i32 = arith.constant 0 : i32
    %c0_i32_0 = arith.constant 0 : i32
    %c0_i32_1 = arith.constant 0 : i32
    return %c0_i32, %c0_i32_0 : i32, i32
  }
  func.func @transform_14(%arg0: i32) -> (i32, i32) {
    %c0_i32 = arith.constant 0 : i32
    %c0_i32_0 = arith.constant 0 : i32
    return %arg0, %c0_i32 : i32, i32
  }
}

</mosaic_0001>

<bundles_post_ra>
// kernel: qdense_forward.1
= control target key start
LH: loop header
LB: loop body
LE: loop exit
PB: predicated region body
PF: predicated region fallthrough
CT: control target
= control target key end

     0   :  { %v559_v2 = vmov 0.0   ;;  %vm560_vm0 = vmmov 0   ;;  %v561_v10 = vmov 0.0|0.0   ;;  %s742_s0 = inlined_call_operand.<no memory space> [shape: f32[1,1], index: 0, kind: input, shape index: {}]   ;;  %s743_s1 = inlined_call_operand.vmem [shape: f32[8,16], index: 1, kind: input, shape index: {}]   ;;  %s744_s2 = inlined_call_operand.vmem [shape: bf16[16,64], index: 2, kind: input, shape index: {}]   ;;  %s745_s3 = inlined_call_operand.vmem [shape: f32[1,64], index: 3, kind: input, shape index: {}]   ;;  %s746_s4 = inlined_call_operand.vmem [shape: f32[1,64], index: 4, kind: input, shape index: {}]   ;;  %s747_s5 = inlined_call_operand.vmem [shape: f32[64,32], index: 5, kind: input, shape index: {}]   ;;  %s748_s6 = inlined_call_operand.vmem [shape: f32[1,32], index: 6, kind: input, shape index: {}]   ;;  %s749_s7 = inlined_call_operand.vmem [shape: f32[1,32], index: 7, kind: input, shape index: {}]   ;;  %s750_s8 = inlined_call_operand.vmem [shape: f32[32,32], index: 8, kind: input, shape index: {}]   ;;  %s751_s9 = inlined_call_operand.vmem [shape: f32[1,32], index: 9, kind: input, shape index: {}]   ;;  %s752_s10 = inlined_call_operand.vmem [shape: f32[1,32], index: 10, kind: input, shape index: {}]   ;;  %s753_s11 = inlined_call_operand.vmem [shape: f32[32,8], index: 11, kind: input, shape index: {}]   ;;  %s754_s12 = inlined_call_operand.vmem [shape: f32[1,8], index: 12, kind: input, shape index: {}]   ;;  %s755_s13 = inlined_call_operand.vmem [shape: f32[1,8], index: 13, kind: input, shape index: {}]   ;;  %s756_s14 = inlined_call_operand.hbm [shape: f32[8,8], index: 14, kind: output, shape index: {}]  }
   0x1   :  { %v534_v0 = vld [vmem:[%s744_s2] sm:$0xff]   ;;  %v52_v1 = vstv %s742_s0  ;;  %458 = vmatprep.subr.bf16.mxu0 %v559_v2  ;;  %v126_v5 = vld [vmem:[%s747_s5 + $0x8] sm:$0xff]  ;;  %460 = vmatprep.mubr.msk.bf16.mxu0 %vm560_vm0, %v559_v2  ;;  %v127_v8 = vld [vmem:[%s747_s5 + $0x10] sm:$0xff] }
   0x2   :  { %v51_v3 = vld [vmem:[%s743_s1] sm:$0xff]  ;;  %459 = vmatpush3.bf16.msra.mxu0 %v534_v0  ;;  %v128_v9 = vld [vmem:[%s747_s5 + $0x18] sm:$0xff]  ;;  %505 = vmatprep.subr.bf16.mxu1 %v561_v10 }
   0x3   :  { %v125_v4 = vld [vmem:[%s747_s5] sm:$0xff]  ;;  %v53_v6 = vmul.f32 %v52_v1, %v51_v3  ;;  %480 = vmatprep.mubr.msk.f32.mxu1 %vm560_vm0, %v559_v2 }
   0x4   :  { %v506_v7 = vpack.c.bf16 %v126_v5, %v125_v4 }
   0x5   :  { %20 = vsyncpa [#allocation4], 0  ;;  %v529_v11 = vround.rtne.f32 %v53_v6  ;;  %v509_v12 = vpack.c.bf16 %v128_v9, %v127_v8  ;;  %517 = vmatprep.subr.bf16.mxu0 %v561_v10  ;;  %v129_v13 = vld [vmem:[%s747_s5 + $0x20] sm:$0xff]  ;;  %v130_v14 = vld [vmem:[%s747_s5 + $0x28] sm:$0xff]  ;;  %vm73_vm1 = vcmask 130048   ;;  %vm140_vm2 = vcmask 523264  }
   0x6   :  { %507 = vmatpush3.bf16.msra.mxu1 %v506_v7  ;;  %v512_v17 = vpack.c.bf16 %v130_v14, %v129_v13  ;;  %v131_v18 = vld [vmem:[%s747_s5 + $0x30] sm:$0xff]  ;;  %v132_v19 = vld [vmem:[%s747_s5 + $0x38] sm:$0xff]  ;;  %v222_v21 = vld [vmem:[%s750_s8] sm:$0xff]  ;;  %vm233_vm3 = vcmask 261120   ;;  %vm407_vm4 = vcmask 64512  }
   0x7   :  { %508 = vmatprep.subr.bf16.mxu1 %v561_v10  ;;  %v423_v15 = vclamps-f32 %v529_v11, 127.0  ;;  %v515_v20 = vpack.c.bf16 %v132_v19, %v131_v18  ;;  %v223_v22 = vld [vmem:[%s750_s8 + $0x8] sm:$0xff]  ;;  %v424_v24 = vld [vmem:[%s745_s3] ss:$0 sm:$0xff]  ;;  %v224_v32 = vld [vmem:[%s750_s8 + $0x10] sm:$0xff] }
   0x8   :  { %v518_v23 = vpack.c.bf16 %v223_v22, %v222_v21  ;;  %v427_v26 = vld [vmem:[%s746_s4] ss:$0 sm:$0xff]  ;;  %v225_v33 = vld [vmem:[%s750_s8 + $0x18] sm:$0xff]  ;;  %v316_v37 = vld [vmem:[%s753_s11 + $0x8] sm:$0xff] }
   0x9   :  { %v57_v16 = vpack.c.bf16 %v423_v15, %v423_v15  ;;  %v521_v34 = vpack.c.bf16 %v225_v33, %v224_v32  ;;  %v428_v35 = vld [vmem:[%s748_s6] ss:$0 sm:$0xff]  ;;  %v317_v44 = vld [vmem:[%s753_s11 + $0x10] sm:$0xff]  ;;  %v318_v45 = vld [vmem:[%s753_s11 + $0x18] sm:$0xff] }
   0xa   :  { %510 = vmatpush3.bf16.msra.mxu1 %v509_v12  ;;  %v315_v36 = vld [vmem:[%s753_s11] sm:$0xff]  ;;  %v527_v46 = vpack.c.bf16 %v318_v45, %v317_v44 }
   0xb   :  { %511 = vmatprep.subr.bf16.mxu1 %v561_v10  ;;  %461 = vmatmul.mubr.msk.bf16.vlgmr.msra.gmra.mrb[0].mxu0 %vm73_vm1, %v57_v16  ;;  %v430_v39 = vld [vmem:[%s749_s7] ss:$0 sm:$0xff]  ;;  %v524_v42 = vpack.c.bf16 %v316_v37, %v315_v36 }
   0xc   :  { %491 = vmatprep.mubr.msk.f32.mxu0 %vm560_vm0, %v559_v2  ;;  %519 = vmatpush3.bf16.msra.mxu0 %v518_v23  ;;  %v431_v47 = vld [vmem:[%s751_s9] ss:$0 sm:$0xff]  ;;  %s562_s9 = smov [#allocation3]  }
   0xd   :  { %520 = vmatprep.subr.bf16.mxu0 %v561_v10  ;;  %v433_v49 = vld [vmem:[%s752_s10] ss:$0 sm:$0xff]  ;;  %s415_s22 = sshll.u32 %s562_s9, 4  ;;  %s416_s22 = int_to_ptr.vmem [resolvable:$true] %s415_s22 }
   0xe   :  { %513 = vmatpush3.bf16.msra.mxu1 %v512_v17  ;;  %v434_v53 = vld [vmem:[%s754_s12] ss:$0 sm:$0xff]  ;;  %s535_s10 = scalar_lea.vmem %s416_s22, 128  ;;  %p540_p1 = scmp.lt.s32.totalorder %s416_s22, %s416_s22 }
   0xf   :  { %514 = vmatprep.subr.bf16.mxu1 %v561_v10  ;;  %v436_v55 = vld [vmem:[%s755_s13] ss:$0 sm:$0xff]  ;;  %p536_p0 = scmp.ne.s32.totalorder %s416_s22, %s535_s10  ;;  %p541_p2 = scmp.lt.s32.totalorder %s535_s10, %s535_s10 }
  0x10   :  { %522 = vmatpush3.bf16.msra.mxu0 %v521_v34 }
  0x11   :  { %523 = vmatprep.subr.bf16.mxu0 %v561_v10  ;;  %p542_p3 = por %p541_p2, %p540_p1 }
  0x12   :  { %516 = vmatpush3.bf16.msra.mxu1 %v515_v20 }
  0x13   :  { %p543_p4 = pnand %p542_p3, %p536_p0 }
  0xde   :  { %v111_v25 = vpop.f32.mrb[0].mxu0 }
  0xdf   :  { %v112_v27 = vadd.f32 %v424_v24, %v111_v25  ;;  %v462_v28 = vpop.f32.mrb[1].mxu0 }
  0xe0   :  { %v114_v29 = vpop.f32.mrb[2].mxu0 }
  0xe1   :  { %v124_v30 = vmul.f32 %v427_v26, %v112_v27  ;;  %v463_v31 = vpop.f32.mrb[3].mxu0 }
  0xe3   :  { %481 = vmatmul.mubr.msk.f32.vlgmr.msra.gmra.mrb[0].mxu1 %vm140_vm2, %v124_v30 }
 0x1b6   :  { %v210_v38 = vpop.f32.mrb[0].mxu1 }
 0x1b7   :  { %v211_v40 = vadd.f32 %v428_v35, %v210_v38  ;;  %v482_v41 = vpop.f32.mrb[1].mxu1 }
 0x1b9   :  { %v221_v43 = vmul.f32 %v430_v39, %v211_v40 }
 0x1bb   :  { %492 = vmatmul.mubr.msk.f32.vlgmr.msra.gmra.mrb[4].mxu0 %vm233_vm3, %v221_v43 }
 0x1bc   :  { %525 = vmatpush3.bf16.msra.mxu0 %v524_v42  ;;  %502 = vmatprep.mubr.msk.f32.mxu0 %vm560_vm0, %v559_v2 }
 0x1bd   :  { %526 = vmatprep.subr.bf16.mxu0 %v561_v10 }
 0x1c0   :  { %528 = vmatpush3.bf16.msra.mxu0 %v527_v46 }
 0x28e   :  { %v303_v48 = vpop.f32.mrb[4].mxu0 }
 0x28f   :  { %v304_v50 = vadd.f32 %v431_v47, %v303_v48  ;;  %v493_v51 = vpop.f32.mrb[5].mxu0 }
 0x291   :  { %v314_v52 = vmul.f32 %v433_v49, %v304_v50 }
 0x293   :  { %503 = vmatmul.mubr.msk.f32.vlgmr.msra.gmra.mrb[6].mxu0 %vm233_vm3, %v314_v52 }
 0x366   :  { %v395_v54 = vpop.f32.mrb[6].mxu0 }
 0x367   :  { %v396_v56 = vadd.f32 %v434_v53, %v395_v54  ;;  %v504_v57 = vpop.f32.mrb[7].mxu0 }
 0x369   :  { %v406_v58 = vmul.f32 %v436_v55, %v396_v56 }
 0x36b   :  { %408 = vst.msk [vmem:[#allocation3] sm:$0xff] %vm407_vm4, %v406_v58 }
 0x36c   :  { %546 = shalt.err (!%p543_p4)
}
 0x36d   :  { %s547_s0 = scalar_lea.hbm %s756_s14, 128 }
 0x36e   :  { %p548_p5 = scmp.ne.s32.totalorder %s756_s14, %s547_s0  ;;  %p551_p6 = scmp.lt.u32.totalorder %s547_s0, %s756_s14 }
 0x370   :  { %p553_p7 = pnand %p551_p6, %p548_p5 }
 0x372   :  { %556 = shalt.err (!%p553_p7)
}
 0x373   :  { %418 = dma.vmem_to_hbm [thread:$0]  %s416_s22, 128, %s756_s14, [#allocation4]  }
 0x374   :  { %557 = dma.done.wait [#allocation4], 128  }
 0x375   :  { %558 = vsyncadd [#allocation4], 4294967168 }
 0x376   :  { %422 = vsyncpa [#allocation4], 1 }

</bundles_post_ra>
